<compile_context>
chip_gen: v7x
topology: tpu7x:2x2x1
jax: 0.10.0
libtpu: 0.0.40
codegen_flags: <defaults>
</compile_context>

<pallas_src>
import functools

import jax
import jax.numpy as jnp
from jax.experimental import pallas as pl
from jax.experimental.pallas import tpu as pltpu

_HID = 128        # padded hidden lane width (>= 64 and >= 32)
_ROW_ALIGN = 16   # bf16 sublane packing alignment for packed-weight row offsets


def _round_up(n, m):
    return ((n + m - 1) // m) * m


def _mlp_kernel(x_ref, w_ref, b_ref, o_ref, *, in_features, in_p, num_classes):
    """One batch tile: (TB, in_features) f32 x packed params -> (TB, C) f32 logits."""
    x = x_ref[...].astype(jnp.bfloat16)                # cast in-register (no HBM pass)
    w1 = w_ref[0:in_features, :]                       # (in_features, 128)
    w2 = w_ref[in_p:in_p + _HID, :]                    # (128, 128), 16-aligned offset
    w3 = w_ref[in_p + _HID:in_p + 2 * _HID, :]         # (128, 128)

    # Linear(input_size, 64) + ReLU  (f32 accumulation / f32 elementwise)
    h = jnp.dot(x, w1, preferred_element_type=jnp.float32)
    h = jnp.maximum(h + b_ref[0:1, :], 0.0).astype(jnp.bfloat16)
    # Linear(64, 32) + ReLU
    h = jnp.dot(h, w2, preferred_element_type=jnp.float32)
    h = jnp.maximum(h + b_ref[1:2, :], 0.0).astype(jnp.bfloat16)
    # Linear(32, num_classes)  (logits, no activation — matches the PyTorch module)
    out = jnp.dot(h, w3, preferred_element_type=jnp.float32) + b_ref[2:3, :]
    o_ref[...] = out[:, :num_classes].astype(o_ref.dtype)


def pack_params(params, input_size, num_classes, compute_dtype=jnp.bfloat16):
    """Pack the three (pre-transposed, (in,out)) linears into one padded weight buffer
    and one bias buffer.  Padded rows/cols are zero so padded hidden lanes stay exactly
    0 through bias+ReLU."""
    assert num_classes <= _HID, "num_classes must be <= 128 for this packing"
    assert 64 <= _HID and 32 <= _HID
    in_p = _round_up(max(input_size, 1), _ROW_ALIGN)
    f32 = jnp.float32
    w1 = jnp.zeros((in_p, _HID), f32).at[:input_size, :64].set(params["w1"])
    w2 = jnp.zeros((_HID, _HID), f32).at[:64, :32].set(params["w2"])
    w3 = jnp.zeros((_HID, _HID), f32).at[:32, :num_classes].set(params["w3"])
    w_packed = jnp.concatenate([w1, w2, w3], axis=0).astype(compute_dtype)

    b_packed = jnp.zeros((3, _HID), f32)
    b_packed = b_packed.at[0, :64].set(params["b1"].reshape(-1))
    b_packed = b_packed.at[1, :32].set(params["b2"].reshape(-1))
    b_packed = b_packed.at[2, :num_classes].set(params["b3"].reshape(-1))
    return w_packed, b_packed


def crime_classifier_forward(x, w_packed, b_packed, num_classes, *, block_batch=2048):
    """x: (B, input_size) f32. Returns (B, num_classes) f32 logits."""
    B, in_features = x.shape
    in_p = w_packed.shape[0] - 2 * _HID
    assert in_features <= in_p

    # Batch tiling: big tiles (default 2048 rows) when B is large to amortize per-step
    # overhead; otherwise a single grid step over the 8-aligned batch.
    block_batch = _round_up(block_batch, 8)
    b_aligned = _round_up(max(B, 1), 8)          # f32 sublane alignment
    tb = min(block_batch, b_aligned)
    b_pad = _round_up(b_aligned, tb)

    if b_pad != B:                               # pad only the batch remainder
        x = jnp.pad(x, ((0, b_pad - B), (0, 0)))

    out_pad = pl.pallas_call(
        functools.partial(_mlp_kernel, in_features=in_features, in_p=in_p,
                          num_classes=num_classes),
        out_shape=jax.ShapeDtypeStruct((b_pad, num_classes), jnp.float32),
        grid=(b_pad // tb,),
        in_specs=[
            pl.BlockSpec((tb, in_features), lambda i: (i, 0)),        # streamed f32 x
            pl.BlockSpec((in_p + 2 * _HID, _HID), lambda i: (0, 0)),  # resident weights
            pl.BlockSpec((3, _HID), lambda i: (0, 0)),                # resident biases
        ],
        out_specs=pl.BlockSpec((tb, num_classes), lambda i: (i, 0)),  # narrow logits
        compiler_params=pltpu.CompilerParams(
            dimension_semantics=("parallel",)),   # shard batch tiles across TCs (v7x)
    )(x, w_packed, b_packed)

    return out_pad if b_pad == B else out_pad[:B]


def init_params(key, input_size, num_classes):
    """Deterministic init mirroring nn.Linear shapes (stored pre-transposed (in,out))."""
    ks = jax.random.split(key, 6)

    def lin(kw, kb, fan_in, fan_out):
        bound = 1.0 / jnp.sqrt(fan_in)
        w = jax.random.uniform(kw, (fan_in, fan_out), jnp.float32, -bound, bound)
        b = jax.random.uniform(kb, (1, fan_out), jnp.float32, -bound, bound)
        return w, b

    w1, b1 = lin(ks[0], ks[1], input_size, 64)
    w2, b2 = lin(ks[2], ks[3], 64, 32)
    w3, b3 = lin(ks[4], ks[5], 32, num_classes)
    return {"w1": w1, "b1": b1, "w2": w2, "b2": b2, "w3": w3, "b3": b3}


if __name__ == "__main__":
    key = jax.random.PRNGKey(0)
    k_x, k_p = jax.random.split(key)

    batch = 8
    input_size = 32
    num_classes = 5

    x = jax.random.normal(k_x, (batch, input_size), dtype=jnp.float32)
    params = init_params(k_p, input_size, num_classes)

    w_packed, b_packed = pack_params(params, input_size, num_classes, jnp.bfloat16)

    out = crime_classifier_forward(x, w_packed, b_packed, num_classes)
    out = jax.block_until_ready(out)
    assert out.shape == (batch, num_classes)
    assert out.dtype == jnp.float32

    # Reference at matched precision (bf16 MXU operands, f32 accumulation / elementwise).
    cd = jnp.bfloat16
    h = jnp.maximum(jnp.dot(x.astype(cd), params["w1"].astype(cd),
                            preferred_element_type=jnp.float32) + params["b1"], 0.0)
    h = jnp.maximum(jnp.dot(h.astype(cd), params["w2"].astype(cd),
                            preferred_element_type=jnp.float32) + params["b2"], 0.0)
    ref_bf16 = jnp.dot(h.astype(cd), params["w3"].astype(cd),
                       preferred_element_type=jnp.float32) + params["b3"]
    assert jnp.allclose(out, ref_bf16, atol=2e-3, rtol=2e-3)

    # Full-f32 PyTorch-semantics reference (looser tolerance for bf16 operand rounding).
    r = jnp.maximum(x @ params["w1"] + params["b1"], 0.0)
    r = jnp.maximum(r @ params["w2"] + params["b2"], 0.0)
    ref_f32 = r @ params["w3"] + params["b3"]
    assert jnp.allclose(out, ref_f32, atol=5e-2, rtol=5e-2)

    print("KERNEL_OK")
</pallas_src>

<mosaic_0001>
module attributes {stable_mosaic.version = 11 : i64} {
  func.func @_mlp_kernel(%arg0: i32, %arg1: memref<8x32xf32, #tpu.memory_space<vmem>>, %arg2: memref<288x128xbf16, #tpu.memory_space<vmem>>, %arg3: memref<3x128xf32, #tpu.memory_space<vmem>>, %arg4: memref<8x5xf32, #tpu.memory_space<vmem>>) attributes {dimension_semantics = [#tpu.dimension_semantics<parallel>], iteration_bounds = array<i64: 1>, scalar_prefetch = 0 : i64, scratch_operands = 0 : i64, tpu.core_type = #tpu.core_type<tc>, window_params = [{transform_indices = @transform_0, window_bounds = array<i64: 8, 32>}, {pipeline_mode = #tpu.pipeline_mode<synchronous>, transform_indices = @transform_1, window_bounds = array<i64: 288, 128>}, {pipeline_mode = #tpu.pipeline_mode<synchronous>, transform_indices = @transform_2, window_bounds = array<i64: 3, 128>}, {transform_indices = @transform_3, window_bounds = array<i64: 8, 5>}]} {
    %c0 = arith.constant 0 : index
    %c0_0 = arith.constant 0 : index
    %0 = vector.load %arg1[%c0, %c0_0] : memref<8x32xf32, #tpu.memory_space<vmem>>, vector<8x32xf32>
    %1 = arith.truncf %0 : vector<8x32xf32> to vector<8x32xbf16>
    %c0_1 = arith.constant 0 : index
    %c0_2 = arith.constant 0 : index
    %2 = vector.load %arg2[%c0_1, %c0_2] : memref<288x128xbf16, #tpu.memory_space<vmem>>, vector<32x128xbf16>
    %c32 = arith.constant 32 : index
    %c0_3 = arith.constant 0 : index
    %3 = vector.load %arg2[%c32, %c0_3] : memref<288x128xbf16, #tpu.memory_space<vmem>>, vector<128x128xbf16>
    %c160 = arith.constant 160 : index
    %c0_4 = arith.constant 0 : index
    %4 = vector.load %arg2[%c160, %c0_4] : memref<288x128xbf16, #tpu.memory_space<vmem>>, vector<128x128xbf16>
    %cst = arith.constant dense<0.000000e+00> : vector<8x128xf32>
    %5 = tpu.matmul %1, %2, %cst {dimension_numbers = #tpu.dot_dimension_numbers<[1], [0], [0], [1], [0, 0, 1, 1], [], []>} : vector<8x32xbf16>, vector<32x128xbf16>, vector<8x128xf32> -> vector<8x128xf32>
    %c0_5 = arith.constant 0 : index
    %c0_6 = arith.constant 0 : index
    %6 = vector.load %arg3[%c0_5, %c0_6] : memref<3x128xf32, #tpu.memory_space<vmem>>, vector<1x128xf32>
    %7 = vector.broadcast %6 : vector<1x128xf32> to vector<8x128xf32>
    %8 = arith.addf %5, %7 : vector<8x128xf32>
    %cst_7 = arith.constant 0.000000e+00 : f32
    %9 = vector.broadcast %cst_7 : f32 to vector<8x128xf32>
    %10 = arith.maximumf %8, %9 : vector<8x128xf32>
    %11 = arith.truncf %10 : vector<8x128xf32> to vector<8x128xbf16>
    %cst_8 = arith.constant dense<0.000000e+00> : vector<8x128xf32>
    %12 = tpu.matmul %11, %3, %cst_8 {dimension_numbers = #tpu.dot_dimension_numbers<[1], [0], [0], [1], [0, 0, 1, 1], [], []>} : vector<8x128xbf16>, vector<128x128xbf16>, vector<8x128xf32> -> vector<8x128xf32>
    %c1 = arith.constant 1 : index
    %c0_9 = arith.constant 0 : index
    %13 = vector.load %arg3[%c1, %c0_9] : memref<3x128xf32, #tpu.memory_space<vmem>>, vector<1x128xf32>
    %14 = vector.broadcast %13 : vector<1x128xf32> to vector<8x128xf32>
    %15 = arith.addf %12, %14 : vector<8x128xf32>
    %cst_10 = arith.constant 0.000000e+00 : f32
    %16 = vector.broadcast %cst_10 : f32 to vector<8x128xf32>
    %17 = arith.maximumf %15, %16 : vector<8x128xf32>
    %18 = arith.truncf %17 : vector<8x128xf32> to vector<8x128xbf16>
    %cst_11 = arith.constant dense<0.000000e+00> : vector<8x128xf32>
    %19 = tpu.matmul %18, %4, %cst_11 {dimension_numbers = #tpu.dot_dimension_numbers<[1], [0], [0], [1], [0, 0, 1, 1], [], []>} : vector<8x128xbf16>, vector<128x128xbf16>, vector<8x128xf32> -> vector<8x128xf32>
    %c2 = arith.constant 2 : index
    %c0_12 = arith.constant 0 : index
    %20 = vector.load %arg3[%c2, %c0_12] : memref<3x128xf32, #tpu.memory_space<vmem>>, vector<1x128xf32>
    %21 = vector.broadcast %20 : vector<1x128xf32> to vector<8x128xf32>
    %22 = arith.addf %19, %21 : vector<8x128xf32>
    %23 = vector.extract_strided_slice %22 {offsets = [0, 0], sizes = [8, 5], strides = [1, 1]} : vector<8x128xf32> to vector<8x5xf32>
    %c0_13 = arith.constant 0 : index
    %c0_14 = arith.constant 0 : index
    %24 = vector.load %arg4[%c0_13, %c0_14] : memref<8x5xf32, #tpu.memory_space<vmem>>, vector<8x5xf32>
    tpu.vector_store %arg4[%c0_13, %c0_14], %23 {strides = array<i32>} : memref<8x5xf32, #tpu.memory_space<vmem>>, vector<8x5xf32>,
    return
  }
  func.func @transform_0(%arg0: i32) -> (i32, i32) {
    %c0_i32 = arith.constant 0 : i32
    %c0_i32_0 = arith.constant 0 : i32
    return %arg0, %c0_i32 : i32, i32
  }
  func.func @transform_1(%arg0: i32) -> (i32, i32) {
    %c0_i32 = arith.constant 0 : i32
    %c0_i32_0 = arith.constant 0 : i32
    %c0_i32_1 = arith.constant 0 : i32
    return %c0_i32, %c0_i32_0 : i32, i32
  }
  func.func @transform_2(%arg0: i32) -> (i32, i32) {
    %c0_i32 = arith.constant 0 : i32
    %c0_i32_0 = arith.constant 0 : i32
    %c0_i32_1 = arith.constant 0 : i32
    return %c0_i32, %c0_i32_0 : i32, i32
  }
  func.func @transform_3(%arg0: i32) -> (i32, i32) {
    %c0_i32 = arith.constant 0 : i32
    %c0_i32_0 = arith.constant 0 : i32
    return %arg0, %c0_i32 : i32, i32
  }
}

</mosaic_0001>

<bundles_post_ra>
// kernel: tpu_custom_call.1
= control target key start
LH: loop header
LB: loop body
LE: loop exit
PB: predicated region body
PF: predicated region fallthrough
CT: control target
= control target key end

     0   :  { %8 = vsyncpa [#allocation3], 0  ;;  %s640_s0 = inlined_call_operand.hbm [shape: f32[8,32], index: 0, kind: input, shape index: {}]   ;;  %s641_s1 = inlined_call_operand.hbm [shape: bf16[288,128], index: 1, kind: input, shape index: {}]   ;;  %s642_s2 = inlined_call_operand.vmem [shape: f32[3,128], index: 2, kind: input, shape index: {}]   ;;  %s643_s3 = inlined_call_operand.hbm [shape: f32[8,5], index: 3, kind: output, shape index: {}]  }
   0x1   :  { %9 = vsyncpa [#allocation6], 0 }
   0x2   :  { %10 = vsyncpa [#allocation4], 0  ;;  %s537_s12 = smov [#allocation2]   ;;  %s538_s14 = smov [#allocation5]  }
   0x3   :  { %s17_s13 = sshll.u32 %s537_s12, 4  ;;  %s26_s15 = sshll.u32 %s538_s14, 4  ;;  %s18_s13 = int_to_ptr.vmem [resolvable:$true] %s17_s13  ;;  %s564_s15 = int_to_ptr.vmem [resolvable:$true] %s26_s15 }
   0x4   :  { %s465_s18 = scalar_lea.hbm %s640_s0, 128 }
   0x5   :  { %p466_p0 = scmp.ne.s32.totalorder %s640_s0, %s465_s18  ;;  %p469_p1 = scmp.lt.u32.totalorder %s465_s18, %s640_s0 }
   0x7   :  { %p471_p2 = pnand %p469_p1, %p466_p0 }
   0x9   :  { %474 = shalt.err (!%p471_p2)
}
   0xa   :  { %s475_s23 = scalar_lea.vmem %s18_s13, 128  ;;  %p480_p4 = scmp.lt.s32.totalorder %s18_s13, %s18_s13 }
   0xb   :  { %p476_p3 = scmp.ne.s32.totalorder %s18_s13, %s475_s23  ;;  %p481_p5 = scmp.lt.s32.totalorder %s475_s23, %s475_s23 }
   0xd   :  { %p482_p6 = por %p481_p5, %p480_p4 }
   0xf   :  { %p483_p7 = pnand %p482_p6, %p476_p3 }
  0x11   :  { %486 = shalt.err (!%p483_p7)
}
  0x12   :  { %20 = dma.hbm_to_vmem [thread:$0]  %s640_s0, 128, %s18_s13, [#allocation3]  }
  0x13   :  { %s487_s28 = scalar_lea.hbm %s641_s1, 2304 }
  0x14   :  { %p488_p8 = scmp.ne.s32.totalorder %s641_s1, %s487_s28  ;;  %p491_p9 = scmp.lt.u32.totalorder %s487_s28, %s641_s1 }
  0x16   :  { %p493_p10 = pnand %p491_p9, %p488_p8 }
  0x18   :  { %496 = shalt.err (!%p493_p10)
}
  0x19   :  { %s497_s6 = scalar_lea.vmem %s564_s15, 2304  ;;  %p502_p12 = scmp.lt.s32.totalorder %s564_s15, %s564_s15 }
  0x1a   :  { %p498_p11 = scmp.ne.s32.totalorder %s564_s15, %s497_s6  ;;  %p503_p13 = scmp.lt.s32.totalorder %s497_s6, %s497_s6 }
  0x1c   :  { %p504_p0 = por %p503_p13, %p502_p12 }
  0x1e   :  { %p505_p1 = pnand %p504_p0, %p498_p11 }
  0x20   :  { %508 = shalt.err (!%p505_p1)
}
  0x21   :  { %s539_s0 = smov 64   ;;  %s540_s7 = smov 4  }
  0x22   :  { %32 = dma.hbm_to_vmem [thread:$0]  %s641_s1, 2304, %s564_s15, [#allocation6], %s539_s0, %s539_s0, %s540_s7  }
  0x23   :  { %531 = dma.done.wait [#allocation3], 128  }
  0x24   :  { %532 = vsyncadd [#allocation3], 4294967168 }
  0x25   :  { %533 = dma.done.wait [#allocation6], 2304  }
  0x26   :  { %534 = vsyncadd [#allocation6], 4294964992  ;;  %v541_v0 = vmov 0.0   ;;  %vm542_vm0 = vmmov 0   ;;  %v447_v1 = vld [vmem:[#allocation5] sm:$0xff]   ;;  %v448_v2 = vld [vmem:[#allocation5 + $0x8] sm:$0xff]  }
  0x27   :  { %392 = vmatprep.subr.bf16.mxu0 %v541_v0  ;;  %396 = vmatprep.mubr.msk.bf16.mxu0 %vm542_vm0, %v541_v0  ;;  %v42_v3 = vld [vmem:[#allocation2] sm:$0xff]  ;;  %v449_v4 = vld [vmem:[#allocation5 + $0x10] sm:$0xff]   ;;  %vm97_vm1 = vcmask 261120   ;;  %v451_v7 = vld [vmem:[#allocation5 + $0x20] sm:$0xff]   ;;  %s543_s15 = smov [#allocation7]   ;;  %vm331_vm2 = vcmask 39936  }
  0x28   :  { %400 = vmatprep.subr.bf16.mxu1 %v541_v0  ;;  %416 = vmatprep.mubr.msk.bf16.mxu1 %vm542_vm0, %v541_v0  ;;  %v43_v5 = vpack.c.bf16 %v42_v3, %v42_v3  ;;  %v450_v6 = vld [vmem:[#allocation5 + $0x18] sm:$0xff]   ;;  %v452_v8 = vld [vmem:[#allocation5 + $0x28] sm:$0xff]   ;;  %v453_v9 = vld [vmem:[#allocation5 + $0x30] sm:$0xff]   ;;  %s339_s16 = sshll.u32 %s543_s15, 4  ;;  %s340_s16 = int_to_ptr.vmem [resolvable:$true] %s339_s16 }
  0x29   :  { %393 = vmatpush3.bf16.msra.mxu0 %v447_v1  ;;  %401 = vmatpush3.bf16.msra.mxu1 %v449_v4  ;;  %v454_v10 = vld [vmem:[#allocation5 + $0x38] sm:$0xff]   ;;  %v455_v11 = vld [vmem:[#allocation5 + $0x40] sm:$0xff]   ;;  %v456_v12 = vld [vmem:[#allocation5 + $0x48] sm:$0xff]   ;;  %s509_s17 = scalar_lea.vmem %s340_s16, 128  ;;  %p514_p3 = scmp.lt.s32.totalorder %s340_s16, %s340_s16 }
  0x2a   :  { %394 = vmatprep.subr.bf16.mxu0 %v541_v0  ;;  %402 = vmatprep.subr.bf16.mxu1 %v541_v0  ;;  %v457_v13 = vld [vmem:[#allocation5 + $0x50] sm:$0xff]   ;;  %v458_v14 = vld [vmem:[#allocation5 + $0x58] sm:$0xff]   ;;  %v459_v15 = vld [vmem:[#allocation5 + $0x60] sm:$0xff]   ;;  %p510_p2 = scmp.ne.s32.totalorder %s340_s16, %s509_s17  ;;  %p515_p4 = scmp.lt.s32.totalorder %s509_s17, %s509_s17 }
  0x2b   :  { %v460_v16 = vld [vmem:[#allocation5 + $0x68] sm:$0xff]   ;;  %v461_v17 = vld [vmem:[#allocation5 + $0x70] sm:$0xff]   ;;  %v462_v18 = vld [vmem:[#allocation5 + $0x78] sm:$0xff]  }
  0x2c   :  { %v349_v19 = vld [vmem:[%s642_s2] ss:$0 sm:$0xff]  ;;  %v463_v27 = vld [vmem:[#allocation5 + $0x80] sm:$0xff]   ;;  %v464_v28 = vld [vmem:[#allocation5 + $0x88] sm:$0xff]   ;;  %p516_p5 = por %p515_p4, %p514_p3 }
  0x2d   :  { %395 = vmatpush3.bf16.msra.mxu0 %v448_v2  ;;  %403 = vmatpush3.bf16.msra.mxu1 %v450_v6  ;;  %v353_v29 = vld [vmem:[%s642_s2 + $0x1] ss:$0 sm:$0xff]  ;;  %v362_v37 = vld [vmem:[%s642_s2 + $0x2] ss:$0 sm:$0xff] }
  0x2e   :  { %420 = vmatprep.subr.bf16.mxu0 %v541_v0  ;;  %404 = vmatprep.subr.bf16.mxu1 %v541_v0  ;;  %p517_p6 = pnand %p516_p5, %p510_p2 }
  0x30   :  { %397 = vmatmul.mubr.msk.bf16.vlgmr.msra.gmra.mrb[0].mxu0 %vm97_vm1, %v43_v5 }
  0x31   :  { %436 = vmatprep.mubr.msk.bf16.mxu0 %vm542_vm0, %v541_v0  ;;  %405 = vmatpush3.bf16.msra.mxu1 %v451_v7 }
  0x32   :  { %406 = vmatprep.subr.bf16.mxu1 %v541_v0  ;;  %421 = vmatpush3.bf16.msra.mxu0 %v457_v13 }
  0x33   :  { %422 = vmatprep.subr.bf16.mxu0 %v541_v0 }
  0x35   :  { %407 = vmatpush3.bf16.msra.mxu1 %v452_v8 }
  0x36   :  { %408 = vmatprep.subr.bf16.mxu1 %v541_v0  ;;  %423 = vmatpush3.bf16.msra.mxu0 %v458_v14 }
  0x37   :  { %424 = vmatprep.subr.bf16.mxu0 %v541_v0 }
  0x39   :  { %409 = vmatpush3.bf16.msra.mxu1 %v453_v9 }
  0x3a   :  { %410 = vmatprep.subr.bf16.mxu1 %v541_v0  ;;  %425 = vmatpush3.bf16.msra.mxu0 %v459_v15 }
  0x3b   :  { %426 = vmatprep.subr.bf16.mxu0 %v541_v0 }
  0x3d   :  { %411 = vmatpush3.bf16.msra.mxu1 %v454_v10 }
  0x3e   :  { %412 = vmatprep.subr.bf16.mxu1 %v541_v0  ;;  %427 = vmatpush3.bf16.msra.mxu0 %v460_v16 }
  0x3f   :  { %428 = vmatprep.subr.bf16.mxu0 %v541_v0 }
  0x41   :  { %413 = vmatpush3.bf16.msra.mxu1 %v455_v11 }
  0x42   :  { %414 = vmatprep.subr.bf16.mxu1 %v541_v0  ;;  %429 = vmatpush3.bf16.msra.mxu0 %v461_v17 }
  0x43   :  { %430 = vmatprep.subr.bf16.mxu0 %v541_v0 }
  0x45   :  { %415 = vmatpush3.bf16.msra.mxu1 %v456_v12 }
  0x46   :  { %431 = vmatpush3.bf16.msra.mxu0 %v462_v18 }
  0x47   :  { %432 = vmatprep.subr.bf16.mxu0 %v541_v0 }
  0x4a   :  { %433 = vmatpush3.bf16.msra.mxu0 %v463_v27 }
  0x4b   :  { %434 = vmatprep.subr.bf16.mxu0 %v541_v0 }
  0x4e   :  { %435 = vmatpush3.bf16.msra.mxu0 %v464_v28 }
 0x103   :  { %v135_v20 = vpop.f32.mrb[0].mxu0 }
 0x104   :  { %v136_v21 = vadd.f32 %v349_v19, %v135_v20  ;;  %v398_v22 = vpop.f32.mrb[1].mxu0 }
 0x105   :  { %v138_v23 = vpop.f32.mrb[2].mxu0 }
 0x106   :  { %v141_v24 = vmax.f32 %v136_v21, 0.0  ;;  %v399_v25 = vpop.f32.mrb[3].mxu0 }
 0x108   :  { %v142_v26 = vpack.c.bf16 %v141_v24, %v141_v24 }
 0x10a   :  { %417 = vmatmul.mubr.bf16.vlgmr.msra.gmra.mrb[0].mxu1 %v142_v26 }
 0x1dd   :  { %v230_v30 = vpop.f32.mrb[0].mxu1 }
 0x1de   :  { %v231_v31 = vadd.f32 %v353_v29, %v230_v30  ;;  %v418_v32 = vpop.f32.mrb[1].mxu1 }
 0x1df   :  { %v233_v33 = vpop.f32.mrb[2].mxu1 }
 0x1e0   :  { %v236_v34 = vmax.f32 %v231_v31, 0.0  ;;  %v419_v35 = vpop.f32.mrb[3].mxu1 }
 0x1e2   :  { %v237_v36 = vpack.c.bf16 %v236_v34, %v236_v34 }
 0x1e4   :  { %437 = vmatmul.mubr.bf16.vlgmr.msra.gmra.mrb[4].mxu0 %v237_v36 }
 0x2b7   :  { %v325_v38 = vpop.f32.mrb[4].mxu0 }
 0x2b8   :  { %v326_v39 = vadd.f32 %v362_v37, %v325_v38  ;;  %v438_v40 = vpop.f32.mrb[5].mxu0 }
 0x2b9   :  { %v328_v41 = vpop.f32.mrb[6].mxu0 }
 0x2ba   :  { %v439_v42 = vpop.f32.mrb[7].mxu0  ;;  %332 = vst.msk [vmem:[#allocation7] sm:$0xff] %vm331_vm2, %v326_v39 }
 0x2bb   :  { %520 = shalt.err (!%p517_p6)
}
 0x2bc   :  { %s521_s2 = scalar_lea.hbm %s643_s3, 128 }
 0x2bd   :  { %p522_p7 = scmp.ne.s32.totalorder %s643_s3, %s521_s2  ;;  %p525_p8 = scmp.lt.u32.totalorder %s521_s2, %s643_s3 }
 0x2bf   :  { %p527_p9 = pnand %p525_p8, %p522_p7 }
 0x2c1   :  { %530 = shalt.err (!%p527_p9)
}
 0x2c2   :  { %342 = dma.vmem_to_hbm [thread:$0]  %s340_s16, 128, %s643_s3, [#allocation4]  }
 0x2c3   :  { %535 = dma.done.wait [#allocation4], 128  }
 0x2c4   :  { %536 = vsyncadd [#allocation4], 4294967168 }
 0x2c5   :  { %346 = vsyncpa [#allocation3], 1 }
 0x2c6   :  { %347 = vsyncpa [#allocation6], 1 }
 0x2c7   :  { %348 = vsyncpa [#allocation4], 1 }

</bundles_post_ra>
